<compile_context>
chip_gen: v6e
topology: v6e:2x2x1
jax: 0.10.0
libtpu: 0.0.40
codegen_flags: <defaults>
</compile_context>

<pallas_src>
import functools

import jax
import jax.numpy as jnp
from jax.experimental import pallas as pl
from jax.experimental.pallas import tpu as pltpu

LANE = 128      # pad every feature dim to the 128-lane width
BN_EPS = 1e-5   # PyTorch BatchNorm1d default


# ----------------------------- Pallas kernel --------------------------------

def _make_fused_kernel(n_layers: int, n_enc_layers: int):
    """One view per grid step; all encoder + decoder layers fused."""

    def kernel(x_ref, w_ref, g_ref, b_ref, out_ref, lat_ref):
        # x_ref  : (1, N, LANE)     padded input view (f32)
        # w_ref  : (L, LANE, LANE)  bf16 weight stack (enc + dec), zero-padded
        # g_ref  : (L, 1, LANE)     BN gamma, zero-padded
        # b_ref  : (L, 1, LANE)     BN beta,  zero-padded
        # out_ref: (1, N, LANE)     decoder output slab (f32)
        # lat_ref: (1, N, LANE)     latent (encoder output) slab (f32)
        h = x_ref[0].astype(jnp.float32)                          # (N, LANE)
        for i in range(n_layers):                                  # static unroll
            # Linear (bias dropped: cancelled exactly by BN mean subtraction).
            y = jnp.dot(h.astype(jnp.bfloat16), w_ref[i],
                        preferred_element_type=jnp.float32)        # (N, LANE) f32
            # BatchNorm1d, training mode: per-view batch stats, biased variance.
            mean = jnp.mean(y, axis=0, keepdims=True)
            centered = y - mean
            var = jnp.mean(centered * centered, axis=0, keepdims=True)
            y_hat = centered * jax.lax.rsqrt(var + BN_EPS)
            # Affine + ReLU (f32 VPU math).
            h = jnp.maximum(g_ref[i] * y_hat + b_ref[i], 0.0)
            if i == n_enc_layers - 1:                              # latent tap
                lat_ref[0] = h.astype(lat_ref.dtype)
        out_ref[0] = h.astype(out_ref.dtype)

    return kernel


@functools.partial(jax.jit, static_argnames=("n_enc_layers",))
def _fused_autoencoder(x_stack, w_stack, g_stack, b_stack, *, n_enc_layers):
    n_views, n, lane = x_stack.shape
    n_layers = w_stack.shape[0]
    kernel = _make_fused_kernel(n_layers, n_enc_layers)
    return pl.pallas_call(
        kernel,
        out_shape=(
            jax.ShapeDtypeStruct((n_views, n, lane), jnp.float32),  # decoder out
            jax.ShapeDtypeStruct((n_views, n, lane), jnp.float32),  # latent
        ),
        grid_spec=pltpu.PrefetchScalarGridSpec(
            num_scalar_prefetch=0,
            grid=(n_views,),
            in_specs=[
                pl.BlockSpec((1, n, lane), lambda v: (v, 0, 0)),           # x view
                pl.BlockSpec((n_layers, lane, lane), lambda v: (0, 0, 0)),  # W stack
                pl.BlockSpec((n_layers, 1, lane), lambda v: (0, 0, 0)),     # gamma
                pl.BlockSpec((n_layers, 1, lane), lambda v: (0, 0, 0)),     # beta
            ],
            out_specs=(
                pl.BlockSpec((1, n, lane), lambda v: (v, 0, 0)),
                pl.BlockSpec((1, n, lane), lambda v: (v, 0, 0)),
            ),
        ),
        compiler_params=pltpu.CompilerParams(
            dimension_semantics=("parallel",),
        ),
    )(x_stack, w_stack, g_stack, b_stack)


# ----------------------------- host-side wrapper -----------------------------

def _pad_last(a, width):
    return jnp.pad(a, [(0, 0)] * (a.ndim - 1) + [(0, width - a.shape[-1])])


def _pad_2d(w, width):
    return jnp.pad(w, ((0, width - w.shape[0]), (0, width - w.shape[1])))


def autoencoder_forward(xs, enc_params, dec_params):
    """AutoEncoder.forward(xs) -> (out, latent); both lists of per-view arrays."""
    n_views = len(xs)
    all_params = list(enc_params) + list(dec_params)

    w_stack = jnp.stack(
        [_pad_2d(w, LANE) for (w, _, _, _) in all_params]).astype(jnp.bfloat16)
    g_stack = jnp.stack([_pad_last(g, LANE) for (_, _, g, _) in all_params])
    b_stack = jnp.stack([_pad_last(be, LANE) for (_, _, _, be) in all_params])
    x_stack = jnp.stack([_pad_last(x.astype(jnp.float32), LANE) for x in xs])

    out_slab, lat_slab = _fused_autoencoder(
        x_stack, w_stack, g_stack, b_stack, n_enc_layers=len(enc_params))

    lat_dim = enc_params[-1][0].shape[1]
    out_dim = dec_params[-1][0].shape[1]
    outs = [out_slab[v, :, :out_dim] for v in range(n_views)]
    lats = [lat_slab[v, :, :lat_dim] for v in range(n_views)]
    return outs, lats


# ----------------------------- params & reference ----------------------------

def init_layer_params(dims, key):
    """PyTorch-style init: Linear U(-1/sqrt(fan_in), +), BN gamma=1, beta=0.
    Weights stored (Din, Dout) so the kernel computes x @ W directly."""
    params = []
    for i in range(len(dims) - 1):
        din, dout = dims[i], dims[i + 1]
        key, kw, kb = jax.random.split(key, 3)
        bound = 1.0 / float(din) ** 0.5
        w = jax.random.uniform(kw, (din, dout), jnp.float32, -bound, bound)
        b = jax.random.uniform(kb, (1, dout), jnp.float32, -bound, bound)
        gamma = jnp.ones((1, dout), jnp.float32)
        beta = jnp.zeros((1, dout), jnp.float32)
        params.append((w, b, gamma, beta))
    return params


def _reference_stack(h, params):
    """Pure-JAX f32 reference (bias included; BN training mode)."""
    for (w, b, g, be) in params:
        y = h @ w + b
        mean = jnp.mean(y, axis=0, keepdims=True)
        var = jnp.mean((y - mean) ** 2, axis=0, keepdims=True)
        y = g * (y - mean) / jnp.sqrt(var + BN_EPS) + be
        h = jnp.maximum(y, 0.0)
    return h


def _reference_autoencoder(xs, enc_params, dec_params):
    lats = [_reference_stack(x.astype(jnp.float32), enc_params) for x in xs]
    outs = [_reference_stack(l, dec_params) for l in lats]
    return outs, lats


# ----------------------------------- main ------------------------------------

if __name__ == "__main__":
    # Small multi-view autoencoder: 2 views, batch=8,
    # encoder dims [16, 32, 8], decoder dims [8, 32, 16].
    enc_dims = [16, 32, 8]
    dec_dims = [8, 32, 16]
    n_views = 2
    batch = 8

    key = jax.random.PRNGKey(0)
    key, *view_keys = jax.random.split(key, n_views + 1)
    xs = [jax.random.normal(k, (batch, enc_dims[0]), jnp.float32)
          for k in view_keys]

    key, k_enc, k_dec = jax.random.split(key, 3)
    enc_params = init_layer_params(enc_dims, k_enc)
    dec_params = init_layer_params(dec_dims, k_dec)

    outs, lats = autoencoder_forward(xs, enc_params, dec_params)
    outs = [jax.block_until_ready(o) for o in outs]
    lats = [jax.block_until_ready(l) for l in lats]

    ref_outs, ref_lats = _reference_autoencoder(xs, enc_params, dec_params)

    # bf16 MXU operands across 4 BN layers -> loosened tolerance vs the f32
    # reference (which also keeps the Linear bias that the kernel drops).
    for o, r in zip(outs, ref_outs):
        assert o.shape == (batch, dec_dims[-1])
        assert jnp.allclose(o, r, atol=5e-2, rtol=5e-2), "decoder output mismatch"
    for l, r in zip(lats, ref_lats):
        assert l.shape == (batch, enc_dims[-1])
        assert jnp.allclose(l, r, atol=5e-2, rtol=5e-2), "latent mismatch"

    print("KERNEL_OK")
</pallas_src>

<mosaic_0001>
module attributes {stable_mosaic.version = 11 : i64} {
  func.func @kernel(%arg0: i32, %arg1: memref<1x8x128xf32, #tpu.memory_space<vmem>>, %arg2: memref<4x128x128xbf16, #tpu.memory_space<vmem>>, %arg3: memref<4x1x128xf32, #tpu.memory_space<vmem>>, %arg4: memref<4x1x128xf32, #tpu.memory_space<vmem>>, %arg5: memref<1x8x128xf32, #tpu.memory_space<vmem>>, %arg6: memref<1x8x128xf32, #tpu.memory_space<vmem>>) attributes {dimension_semantics = [#tpu.dimension_semantics<parallel>], iteration_bounds = array<i64: 2>, scalar_prefetch = 0 : i64, scratch_operands = 0 : i64, tpu.core_type = #tpu.core_type<tc>, window_params = [{transform_indices = @transform_0, window_bounds = array<i64: 1, 8, 128>}, {pipeline_mode = #tpu.pipeline_mode<synchronous>, transform_indices = @transform_1, window_bounds = array<i64: 4, 128, 128>}, {pipeline_mode = #tpu.pipeline_mode<synchronous>, transform_indices = @transform_2, window_bounds = array<i64: 4, 1, 128>}, {pipeline_mode = #tpu.pipeline_mode<synchronous>, transform_indices = @transform_3, window_bounds = array<i64: 4, 1, 128>}, {transform_indices = @transform_4, window_bounds = array<i64: 1, 8, 128>}, {transform_indices = @transform_5, window_bounds = array<i64: 1, 8, 128>}]} {
    %c0 = arith.constant 0 : index
    %c0_0 = arith.constant 0 : index
    %c0_1 = arith.constant 0 : index
    %0 = vector.load %arg1[%c0, %c0_0, %c0_1] : memref<1x8x128xf32, #tpu.memory_space<vmem>>, vector<1x8x128xf32>
    %1 = vector.shape_cast %0 : vector<1x8x128xf32> to vector<8x128xf32>
    %2 = arith.truncf %1 : vector<8x128xf32> to vector<8x128xbf16>
    %c0_2 = arith.constant 0 : index
    %c0_3 = arith.constant 0 : index
    %c0_4 = arith.constant 0 : index
    %3 = vector.load %arg2[%c0_2, %c0_3, %c0_4] : memref<4x128x128xbf16, #tpu.memory_space<vmem>>, vector<1x128x128xbf16>
    %4 = vector.shape_cast %3 : vector<1x128x128xbf16> to vector<128x128xbf16>
    %cst = arith.constant dense<0.000000e+00> : vector<8x128xf32>
    %5 = tpu.matmul %2, %4, %cst {dimension_numbers = #tpu.dot_dimension_numbers<[1], [0], [0], [1], [0, 0, 1, 1], [], []>} : vector<8x128xbf16>, vector<128x128xbf16>, vector<8x128xf32> -> vector<8x128xf32>
    %cst_5 = arith.constant dense<0.000000e+00> : vector<128xf32>
    %6 = vector.multi_reduction <add>, %5, %cst_5 [0] : vector<8x128xf32> to vector<128xf32>
    %7 = vector.shape_cast %6 : vector<128xf32> to vector<1x128xf32>
    %cst_6 = arith.constant 8.000000e+00 : f32
    %8 = vector.broadcast %cst_6 : f32 to vector<1x128xf32>
    %9 = arith.divf %7, %8 : vector<1x128xf32>
    %10 = vector.broadcast %9 : vector<1x128xf32> to vector<8x128xf32>
    %11 = arith.subf %5, %10 : vector<8x128xf32>
    %12 = arith.mulf %11, %11 : vector<8x128xf32>
    %cst_7 = arith.constant dense<0.000000e+00> : vector<128xf32>
    %13 = vector.multi_reduction <add>, %12, %cst_7 [0] : vector<8x128xf32> to vector<128xf32>
    %14 = vector.shape_cast %13 : vector<128xf32> to vector<1x128xf32>
    %cst_8 = arith.constant 8.000000e+00 : f32
    %15 = vector.broadcast %cst_8 : f32 to vector<1x128xf32>
    %16 = arith.divf %14, %15 : vector<1x128xf32>
    %cst_9 = arith.constant 9.99999974E-6 : f32
    %17 = vector.broadcast %cst_9 : f32 to vector<1x128xf32>
    %18 = arith.addf %16, %17 : vector<1x128xf32>
    %19 = math.rsqrt %18 : vector<1x128xf32>
    %20 = vector.broadcast %19 : vector<1x128xf32> to vector<8x128xf32>
    %21 = arith.mulf %11, %20 : vector<8x128xf32>
    %c0_10 = arith.constant 0 : index
    %c0_11 = arith.constant 0 : index
    %c0_12 = arith.constant 0 : index
    %22 = vector.load %arg3[%c0_10, %c0_11, %c0_12] : memref<4x1x128xf32, #tpu.memory_space<vmem>>, vector<1x1x128xf32>
    %23 = vector.shape_cast %22 : vector<1x1x128xf32> to vector<1x128xf32>
    %24 = vector.broadcast %23 : vector<1x128xf32> to vector<8x128xf32>
    %25 = arith.mulf %24, %21 : vector<8x128xf32>
    %c0_13 = arith.constant 0 : index
    %c0_14 = arith.constant 0 : index
    %c0_15 = arith.constant 0 : index
    %26 = vector.load %arg4[%c0_13, %c0_14, %c0_15] : memref<4x1x128xf32, #tpu.memory_space<vmem>>, vector<1x1x128xf32>
    %27 = vector.shape_cast %26 : vector<1x1x128xf32> to vector<1x128xf32>
    %28 = vector.broadcast %27 : vector<1x128xf32> to vector<8x128xf32>
    %29 = arith.addf %25, %28 : vector<8x128xf32>
    %cst_16 = arith.constant 0.000000e+00 : f32
    %30 = vector.broadcast %cst_16 : f32 to vector<8x128xf32>
    %31 = arith.maximumf %29, %30 : vector<8x128xf32>
    %32 = arith.truncf %31 : vector<8x128xf32> to vector<8x128xbf16>
    %c1 = arith.constant 1 : index
    %c0_17 = arith.constant 0 : index
    %c0_18 = arith.constant 0 : index
    %33 = vector.load %arg2[%c1, %c0_17, %c0_18] : memref<4x128x128xbf16, #tpu.memory_space<vmem>>, vector<1x128x128xbf16>
    %34 = vector.shape_cast %33 : vector<1x128x128xbf16> to vector<128x128xbf16>
    %cst_19 = arith.constant dense<0.000000e+00> : vector<8x128xf32>
    %35 = tpu.matmul %32, %34, %cst_19 {dimension_numbers = #tpu.dot_dimension_numbers<[1], [0], [0], [1], [0, 0, 1, 1], [], []>} : vector<8x128xbf16>, vector<128x128xbf16>, vector<8x128xf32> -> vector<8x128xf32>
    %cst_20 = arith.constant dense<0.000000e+00> : vector<128xf32>
    %36 = vector.multi_reduction <add>, %35, %cst_20 [0] : vector<8x128xf32> to vector<128xf32>
    %37 = vector.shape_cast %36 : vector<128xf32> to vector<1x128xf32>
    %cst_21 = arith.constant 8.000000e+00 : f32
    %38 = vector.broadcast %cst_21 : f32 to vector<1x128xf32>
    %39 = arith.divf %37, %38 : vector<1x128xf32>
    %40 = vector.broadcast %39 : vector<1x128xf32> to vector<8x128xf32>
    %41 = arith.subf %35, %40 : vector<8x128xf32>
    %42 = arith.mulf %41, %41 : vector<8x128xf32>
    %cst_22 = arith.constant dense<0.000000e+00> : vector<128xf32>
    %43 = vector.multi_reduction <add>, %42, %cst_22 [0] : vector<8x128xf32> to vector<128xf32>
    %44 = vector.shape_cast %43 : vector<128xf32> to vector<1x128xf32>
    %cst_23 = arith.constant 8.000000e+00 : f32
    %45 = vector.broadcast %cst_23 : f32 to vector<1x128xf32>
    %46 = arith.divf %44, %45 : vector<1x128xf32>
    %cst_24 = arith.constant 9.99999974E-6 : f32
    %47 = vector.broadcast %cst_24 : f32 to vector<1x128xf32>
    %48 = arith.addf %46, %47 : vector<1x128xf32>
    %49 = math.rsqrt %48 : vector<1x128xf32>
    %50 = vector.broadcast %49 : vector<1x128xf32> to vector<8x128xf32>
    %51 = arith.mulf %41, %50 : vector<8x128xf32>
    %c1_25 = arith.constant 1 : index
    %c0_26 = arith.constant 0 : index
    %c0_27 = arith.constant 0 : index
    %52 = vector.load %arg3[%c1_25, %c0_26, %c0_27] : memref<4x1x128xf32, #tpu.memory_space<vmem>>, vector<1x1x128xf32>
    %53 = vector.shape_cast %52 : vector<1x1x128xf32> to vector<1x128xf32>
    %54 = vector.broadcast %53 : vector<1x128xf32> to vector<8x128xf32>
    %55 = arith.mulf %54, %51 : vector<8x128xf32>
    %c1_28 = arith.constant 1 : index
    %c0_29 = arith.constant 0 : index
    %c0_30 = arith.constant 0 : index
    %56 = vector.load %arg4[%c1_28, %c0_29, %c0_30] : memref<4x1x128xf32, #tpu.memory_space<vmem>>, vector<1x1x128xf32>
    %57 = vector.shape_cast %56 : vector<1x1x128xf32> to vector<1x128xf32>
    %58 = vector.broadcast %57 : vector<1x128xf32> to vector<8x128xf32>
    %59 = arith.addf %55, %58 : vector<8x128xf32>
    %cst_31 = arith.constant 0.000000e+00 : f32
    %60 = vector.broadcast %cst_31 : f32 to vector<8x128xf32>
    %61 = arith.maximumf %59, %60 : vector<8x128xf32>
    %c0_32 = arith.constant 0 : index
    %c0_33 = arith.constant 0 : index
    %c0_34 = arith.constant 0 : index
    %62 = vector.load %arg6[%c0_32, %c0_33, %c0_34] : memref<1x8x128xf32, #tpu.memory_space<vmem>>, vector<1x8x128xf32>
    %63 = vector.shape_cast %62 : vector<1x8x128xf32> to vector<8x128xf32>
    %64 = vector.shape_cast %61 : vector<8x128xf32> to vector<1x8x128xf32>
    tpu.vector_store %arg6[%c0_32, %c0_33, %c0_34], %64 {strides = array<i32>} : memref<1x8x128xf32, #tpu.memory_space<vmem>>, vector<1x8x128xf32>,
    %65 = arith.truncf %61 : vector<8x128xf32> to vector<8x128xbf16>
    %c2 = arith.constant 2 : index
    %c0_35 = arith.constant 0 : index
    %c0_36 = arith.constant 0 : index
    %66 = vector.load %arg2[%c2, %c0_35, %c0_36] : memref<4x128x128xbf16, #tpu.memory_space<vmem>>, vector<1x128x128xbf16>
    %67 = vector.shape_cast %66 : vector<1x128x128xbf16> to vector<128x128xbf16>
    %cst_37 = arith.constant dense<0.000000e+00> : vector<8x128xf32>
    %68 = tpu.matmul %65, %67, %cst_37 {dimension_numbers = #tpu.dot_dimension_numbers<[1], [0], [0], [1], [0, 0, 1, 1], [], []>} : vector<8x128xbf16>, vector<128x128xbf16>, vector<8x128xf32> -> vector<8x128xf32>
    %cst_38 = arith.constant dense<0.000000e+00> : vector<128xf32>
    %69 = vector.multi_reduction <add>, %68, %cst_38 [0] : vector<8x128xf32> to vector<128xf32>
    %70 = vector.shape_cast %69 : vector<128xf32> to vector<1x128xf32>
    %cst_39 = arith.constant 8.000000e+00 : f32
    %71 = vector.broadcast %cst_39 : f32 to vector<1x128xf32>
    %72 = arith.divf %70, %71 : vector<1x128xf32>
    %73 = vector.broadcast %72 : vector<1x128xf32> to vector<8x128xf32>
    %74 = arith.subf %68, %73 : vector<8x128xf32>
    %75 = arith.mulf %74, %74 : vector<8x128xf32>
    %cst_40 = arith.constant dense<0.000000e+00> : vector<128xf32>
    %76 = vector.multi_reduction <add>, %75, %cst_40 [0] : vector<8x128xf32> to vector<128xf32>
    %77 = vector.shape_cast %76 : vector<128xf32> to vector<1x128xf32>
    %cst_41 = arith.constant 8.000000e+00 : f32
    %78 = vector.broadcast %cst_41 : f32 to vector<1x128xf32>
    %79 = arith.divf %77, %78 : vector<1x128xf32>
    %cst_42 = arith.constant 9.99999974E-6 : f32
    %80 = vector.broadcast %cst_42 : f32 to vector<1x128xf32>
    %81 = arith.addf %79, %80 : vector<1x128xf32>
    %82 = math.rsqrt %81 : vector<1x128xf32>
    %83 = vector.broadcast %82 : vector<1x128xf32> to vector<8x128xf32>
    %84 = arith.mulf %74, %83 : vector<8x128xf32>
    %c2_43 = arith.constant 2 : index
    %c0_44 = arith.constant 0 : index
    %c0_45 = arith.constant 0 : index
    %85 = vector.load %arg3[%c2_43, %c0_44, %c0_45] : memref<4x1x128xf32, #tpu.memory_space<vmem>>, vector<1x1x128xf32>
    %86 = vector.shape_cast %85 : vector<1x1x128xf32> to vector<1x128xf32>
    %87 = vector.broadcast %86 : vector<1x128xf32> to vector<8x128xf32>
    %88 = arith.mulf %87, %84 : vector<8x128xf32>
    %c2_46 = arith.constant 2 : index
    %c0_47 = arith.constant 0 : index
    %c0_48 = arith.constant 0 : index
    %89 = vector.load %arg4[%c2_46, %c0_47, %c0_48] : memref<4x1x128xf32, #tpu.memory_space<vmem>>, vector<1x1x128xf32>
    %90 = vector.shape_cast %89 : vector<1x1x128xf32> to vector<1x128xf32>
    %91 = vector.broadcast %90 : vector<1x128xf32> to vector<8x128xf32>
    %92 = arith.addf %88, %91 : vector<8x128xf32>
    %cst_49 = arith.constant 0.000000e+00 : f32
    %93 = vector.broadcast %cst_49 : f32 to vector<8x128xf32>
    %94 = arith.maximumf %92, %93 : vector<8x128xf32>
    %95 = arith.truncf %94 : vector<8x128xf32> to vector<8x128xbf16>
    %c3 = arith.constant 3 : index
    %c0_50 = arith.constant 0 : index
    %c0_51 = arith.constant 0 : index
    %96 = vector.load %arg2[%c3, %c0_50, %c0_51] : memref<4x128x128xbf16, #tpu.memory_space<vmem>>, vector<1x128x128xbf16>
    %97 = vector.shape_cast %96 : vector<1x128x128xbf16> to vector<128x128xbf16>
    %cst_52 = arith.constant dense<0.000000e+00> : vector<8x128xf32>
    %98 = tpu.matmul %95, %97, %cst_52 {dimension_numbers = #tpu.dot_dimension_numbers<[1], [0], [0], [1], [0, 0, 1, 1], [], []>} : vector<8x128xbf16>, vector<128x128xbf16>, vector<8x128xf32> -> vector<8x128xf32>
    %cst_53 = arith.constant dense<0.000000e+00> : vector<128xf32>
    %99 = vector.multi_reduction <add>, %98, %cst_53 [0] : vector<8x128xf32> to vector<128xf32>
    %100 = vector.shape_cast %99 : vector<128xf32> to vector<1x128xf32>
    %cst_54 = arith.constant 8.000000e+00 : f32
    %101 = vector.broadcast %cst_54 : f32 to vector<1x128xf32>
    %102 = arith.divf %100, %101 : vector<1x128xf32>
    %103 = vector.broadcast %102 : vector<1x128xf32> to vector<8x128xf32>
    %104 = arith.subf %98, %103 : vector<8x128xf32>
    %105 = arith.mulf %104, %104 : vector<8x128xf32>
    %cst_55 = arith.constant dense<0.000000e+00> : vector<128xf32>
    %106 = vector.multi_reduction <add>, %105, %cst_55 [0] : vector<8x128xf32> to vector<128xf32>
    %107 = vector.shape_cast %106 : vector<128xf32> to vector<1x128xf32>
    %cst_56 = arith.constant 8.000000e+00 : f32
    %108 = vector.broadcast %cst_56 : f32 to vector<1x128xf32>
    %109 = arith.divf %107, %108 : vector<1x128xf32>
    %cst_57 = arith.constant 9.99999974E-6 : f32
    %110 = vector.broadcast %cst_57 : f32 to vector<1x128xf32>
    %111 = arith.addf %109, %110 : vector<1x128xf32>
    %112 = math.rsqrt %111 : vector<1x128xf32>
    %113 = vector.broadcast %112 : vector<1x128xf32> to vector<8x128xf32>
    %114 = arith.mulf %104, %113 : vector<8x128xf32>
    %c3_58 = arith.constant 3 : index
    %c0_59 = arith.constant 0 : index
    %c0_60 = arith.constant 0 : index
    %115 = vector.load %arg3[%c3_58, %c0_59, %c0_60] : memref<4x1x128xf32, #tpu.memory_space<vmem>>, vector<1x1x128xf32>
    %116 = vector.shape_cast %115 : vector<1x1x128xf32> to vector<1x128xf32>
    %117 = vector.broadcast %116 : vector<1x128xf32> to vector<8x128xf32>
    %118 = arith.mulf %117, %114 : vector<8x128xf32>
    %c3_61 = arith.constant 3 : index
    %c0_62 = arith.constant 0 : index
    %c0_63 = arith.constant 0 : index
    %119 = vector.load %arg4[%c3_61, %c0_62, %c0_63] : memref<4x1x128xf32, #tpu.memory_space<vmem>>, vector<1x1x128xf32>
    %120 = vector.shape_cast %119 : vector<1x1x128xf32> to vector<1x128xf32>
    %121 = vector.broadcast %120 : vector<1x128xf32> to vector<8x128xf32>
    %122 = arith.addf %118, %121 : vector<8x128xf32>
    %cst_64 = arith.constant 0.000000e+00 : f32
    %123 = vector.broadcast %cst_64 : f32 to vector<8x128xf32>
    %124 = arith.maximumf %122, %123 : vector<8x128xf32>
    %c0_65 = arith.constant 0 : index
    %c0_66 = arith.constant 0 : index
    %c0_67 = arith.constant 0 : index
    %125 = vector.load %arg5[%c0_65, %c0_66, %c0_67] : memref<1x8x128xf32, #tpu.memory_space<vmem>>, vector<1x8x128xf32>
    %126 = vector.shape_cast %125 : vector<1x8x128xf32> to vector<8x128xf32>
    %127 = vector.shape_cast %124 : vector<8x128xf32> to vector<1x8x128xf32>
    tpu.vector_store %arg5[%c0_65, %c0_66, %c0_67], %127 {strides = array<i32>} : memref<1x8x128xf32, #tpu.memory_space<vmem>>, vector<1x8x128xf32>,
    return
  }
  func.func @transform_0(%arg0: i32) -> (i32, i32, i32) {
    %c0_i32 = arith.constant 0 : i32
    %c0_i32_0 = arith.constant 0 : i32
    %c0_i32_1 = arith.constant 0 : i32
    return %arg0, %c0_i32, %c0_i32_0 : i32, i32, i32
  }
  func.func @transform_1(%arg0: i32) -> (i32, i32, i32) {
    %c0_i32 = arith.constant 0 : i32
    %c0_i32_0 = arith.constant 0 : i32
    %c0_i32_1 = arith.constant 0 : i32
    %c0_i32_2 = arith.constant 0 : i32
    return %c0_i32, %c0_i32_0, %c0_i32_1 : i32, i32, i32
  }
  func.func @transform_2(%arg0: i32) -> (i32, i32, i32) {
    %c0_i32 = arith.constant 0 : i32
    %c0_i32_0 = arith.constant 0 : i32
    %c0_i32_1 = arith.constant 0 : i32
    %c0_i32_2 = arith.constant 0 : i32
    return %c0_i32, %c0_i32_0, %c0_i32_1 : i32, i32, i32
  }
  func.func @transform_3(%arg0: i32) -> (i32, i32, i32) {
    %c0_i32 = arith.constant 0 : i32
    %c0_i32_0 = arith.constant 0 : i32
    %c0_i32_1 = arith.constant 0 : i32
    %c0_i32_2 = arith.constant 0 : i32
    return %c0_i32, %c0_i32_0, %c0_i32_1 : i32, i32, i32
  }
  func.func @transform_4(%arg0: i32) -> (i32, i32, i32) {
    %c0_i32 = arith.constant 0 : i32
    %c0_i32_0 = arith.constant 0 : i32
    %c0_i32_1 = arith.constant 0 : i32
    return %arg0, %c0_i32, %c0_i32_0 : i32, i32, i32
  }
  func.func @transform_5(%arg0: i32) -> (i32, i32, i32) {
    %c0_i32 = arith.constant 0 : i32
    %c0_i32_0 = arith.constant 0 : i32
    %c0_i32_1 = arith.constant 0 : i32
    return %arg0, %c0_i32, %c0_i32_0 : i32, i32, i32
  }
}

</mosaic_0001>

<bundles_post_ra>
// kernel: _fused_autoencoder.1
= control target key start
LH: loop header
LB: loop body
LE: loop exit
PB: predicated region body
PF: predicated region fallthrough
CT: control target
= control target key end

     0   :  { %11 = vsyncpa [#allocation3], 0  ;;  %s1776_s0 = inlined_call_operand.hbm [shape: f32[2,8,128], index: 0, kind: input, shape index: {}]   ;;  %s1777_s1 = inlined_call_operand.hbm [shape: bf16[4,128,128], index: 1, kind: input, shape index: {}]   ;;  %s1778_s2 = inlined_call_operand.hbm [shape: f32[4,1,128], index: 2, kind: input, shape index: {}]   ;;  %s1779_s3 = inlined_call_operand.vmem [shape: f32[4,1,128], index: 3, kind: input, shape index: {}]   ;;  %s1780_s4 = inlined_call_operand.hbm [shape: f32[2,8,128], index: 4, kind: output, shape index: {0}]   ;;  %s1781_s5 = inlined_call_operand.hbm [shape: f32[2,8,128], index: 5, kind: output, shape index: {1}]  }
   0x1   :  { %13 = vsyncpa [#allocation3 + $0x1], 0 }
   0x2   :  { %14 = vsyncpa [#allocation6], 0 }
   0x3   :  { %15 = vsyncpa [#allocation4], 0 }
   0x4   :  { %17 = vsyncpa [#allocation4 + $0x1], 0 }
   0x5   :  { %18 = vsyncpa [#allocation10], 0 }
   0x6   :  { %20 = vsyncpa [#allocation10 + $0x1], 0  ;;  %s1528_s18 = smov 0   ;;  %s1530_s19 = smov 0  }
   0x7   :  { %s1532_s20 = smov 0   ;;  %s1534_s21 = smov 0  }
   0x8 LB: > { %s1549_s22 = sadd.s32 4294967295, %s1485_s21   ;;  %s1011_s23 = sadd.s32 4294967294, %s1485_s21   ;;  %s1485_s21 = sphi %s1534_s21, %s1803_s21   ;;  %s1481_s20 = sphi %s1532_s20, %s1802_s20   ;;  %s1477_s19 = sphi %s1530_s19, %s1801_s19   ;;  %s1473_s18 = sphi %s1528_s18, %s1800_s18  }
   0x9   : > { %p46_p0 = scmp.ne.s32.totalorder %s1477_s19, %s1473_s18  ;;  %p1782_p1 = scmp.eq.s32.totalorder %s1549_s22, 0 }
   0xa   : > { %p139_p3 = scmp.eq.s32.totalorder %s1011_s23, 1  ;;  %p1012_p5 = scmp.ge.s32.totalorder %s1485_s21, 1 }
   0xb   : > { %p1558_p4 = por %p1782_p1, %p46_p0  ;;  %p172_p7 = scmp.lt.s32.totalorder %s1485_s21, 3 }
   0xc   : > { %p1563_p6 = por %p139_p3, %p46_p0  ;;  %s1487_s27 = smov [#allocation5]  }
   0xd   : > { %s1786_s24 = scalar_select %p1558_p4, 1, 0 }
   0xe   : > { %s1787_s25 = scalar_select %p1563_p6, 1, 0 }
   0xf   : > { %p1568_p8 = pnand %p1012_p5, %p172_p7  ;;  %s184_s28 = sshll.u32 %s1487_s27, 4  ;;  %s185_s28 = int_to_ptr.vmem [resolvable:$true] %s184_s28 }
  0x10   : > { %s1488_s30 = smov [#allocation7]   ;;  %s1318_s7 = scalar_lea.vmem %s185_s28, 4096 }
  0x11   : > { %s1788_s26 = scalar_select %p1568_p8, 1, 0 }
  0x12   : > { %p1203_p9 = pneg %p1568_p8  ;;  %s197_s6 = sshll.u32 %s1488_s30, 4  ;;  %s198_s6 = int_to_ptr.vmem [resolvable:$true] %s197_s6 }
  0x13   : > { %p1319_p13 = scmp.ne.s32.totalorder %s185_s28, %s1318_s7  ;;  %p1326_p5 = scmp.lt.s32.totalorder %s185_s28, %s185_s28 }
  0x14   : > { %p1577_p11 = pnand %p1203_p9, %p1782_p1  ;;  %p1327_p7 = scmp.lt.s32.totalorder %s1318_s7, %s1318_s7 }
  0x16   : > { %p1309_p12 = pneg %p1577_p11  ;;  %p1328_p10 = por %p1327_p7, %p1326_p5 }
  0x18   : > { %p1321_p0 = pnand %p1319_p13, %p1309_p12 }
  0x1a   : > { %p1322_p3 = pneg %p1321_p0 }
  0x1c   : > { %p1329_p9 = pnand %p1328_p10, %p1322_p3 }
  0x1e   : > { %1332 = shalt.err (!%p1329_p9)
}
  0x1f   : > { %s1489_s8 = smov 64   ;;  %s1490_s9 = smov 4  }
  0x20   : > { %1206 = dma.hbm_to_vmem [thread:$0]  (!%p1577_p11), %s1777_s1, 4096, %s185_s28, [#allocation6], %s1489_s8, %s1489_s8, %s1490_s9  }
  0x21   : > { %s1344_s12 = scalar_lea.vmem %s198_s6, 64  ;;  %p1352_p2 = scmp.lt.s32.totalorder %s198_s6, %s198_s6 }
  0x22   : > { %p1345_p1 = scmp.ne.s32.totalorder %s198_s6, %s1344_s12  ;;  %p1353_p6 = scmp.lt.s32.totalorder %s1344_s12, %s1344_s12 }
  0x24   : > { %p1347_p13 = pnand %p1345_p1, %p1309_p12  ;;  %p1354_p5 = por %p1353_p6, %p1352_p2 }
  0x26   : > { %p1348_p0 = pneg %p1347_p13 }
  0x28   : > { %p1355_p10 = pnand %p1354_p5, %p1348_p0 }
  0x2a   : > { %1358 = shalt.err (!%p1355_p10)
}
  0x2b   : > { %s1491_s13 = smov 16   ;;  %s1492_s14 = smov 1  }
  0x2c   : > { %1209 = dma.hbm_to_vmem [thread:$0]  (!%p1577_p11), %s1778_s2, 64, %s198_s6, [#allocation6], %s1491_s13, %s1491_s13, %s1492_s14  }
  0x2d   : > { %s1600_s17 = sadd.s32 1, %s1485_s21   ;;  %s33_s27 = sadd.s32 1, %s1481_s20 }
  0x2e   : > { %s30_s23 = ssub.s32 %s1485_s21, %s1600_s17  ;;  %p40_p2 = scmp.ne.s32.totalorder %s1481_s20, %s1477_s19 }
  0x2f   : > { %p31_p1 = scmp.eq.s32.totalorder %s30_s23, 0  ;;  %p41_p6 = scmp.eq.s32.totalorder %s1485_s21, 0 }
  0x30   : > { %p1790_p3 = scmp.eq.s32.totalorder %s1549_s22, 1  ;;  %p1223_p9 = scmp.lt.s32.totalorder %s1485_s21, 2 }
  0x31   : > { %s1609_s28 = scalar_select %p31_p1, %s1481_s20, %s33_s27  }
  0x32   : > { %p42_p12 = por %p41_p6, %p40_p2  ;;  %p1613_p7 = por %p1790_p3, %p40_p2 }
  0x33   : > { %s214_s29 = sand.u32 1, %s1481_s20   ;;  %s1017_s6 = sshll.u32 %s1485_s21, 7 }
  0x34   : > { %s1791_s30 = scalar_select %p1613_p7, 1, 0 }
  0x35   : > { %s1016_s7 = sshll.u32 %s214_s29, 3  ;;  %s1623_s10 = scalar_lea.hbm %s1776_s0, %s1017_s6 }
  0x36   : > { %s218_s11 = scalar_lea.vmem [#allocation2], %s1016_s7  ;;  %p1625_p11 = pnand %p1223_p9, %p42_p12 }
  0x37   : > { %s225_s12 = sshll.u32 %s218_s11, 4  ;;  %s215_s14 = scalar_lea.sflag [#allocation3], %s214_s29  ;;  %s226_s12 = int_to_ptr.vmem [resolvable:$true] %s225_s12 }
  0x38   : > { %s1359_s15 = scalar_lea.hbm %s1623_s10, 128  ;;  %p1361_p0 = pneg %p1625_p11 }
  0x39   : > { %p1360_p13 = scmp.ne.s32.totalorder %s1623_s10, %s1359_s15  ;;  %s1364_s27 = scalar_lea.hbm %s1776_s0, 256 }
  0x3a   : > { %p1365_p1 = scmp.lt.s32.totalorder %s1623_s10, %s1776_s0  ;;  %p1366_p2 = scmp.lt.s32.totalorder %s1364_s27, %s1359_s15 }
  0x3b   : > { %p1362_p5 = pnand %p1361_p0, %p1360_p13 }
  0x3c   : > { %p1367_p6 = por %p1366_p2, %p1365_p1 }
  0x3d   : > { %p1363_p10 = pneg %p1362_p5 }
  0x3f   : > { %p1368_p12 = pnand %p1367_p6, %p1363_p10 }
  0x41   : > { %1371 = shalt.err (!%p1368_p12)
}
  0x42   : > { %s1372_s8 = scalar_lea.vmem %s226_s12, 128  ;;  %s1493_s29 = smov [#allocation2]  }
  0x43   : > { %p1373_p3 = scmp.ne.s32.totalorder %s226_s12, %s1372_s8  ;;  %s1377_s9 = sshll.u32 %s1493_s29, 4  ;;  %s1378_s9 = int_to_ptr.vmem [resolvable:$false] %s1377_s9 }
  0x44   : > { %s1379_s11 = scalar_lea.vmem %s1378_s9, 256  ;;  %p1380_p13 = scmp.lt.s32.totalorder %s226_s12, %s1378_s9 }
  0x45   : > { %p1375_p9 = pnand %p1373_p3, %p1361_p0  ;;  %p1381_p5 = scmp.lt.s32.totalorder %s1379_s11, %s1372_s8 }
  0x47   : > { %p1376_p7 = pneg %p1375_p9  ;;  %p1382_p4 = por %p1381_p5, %p1380_p13 }
  0x49   : > { %p1383_p8 = pnand %p1382_p4, %p1376_p7 }
  0x4b   : > { %1386 = shalt.err (!%p1383_p8)
}
  0x4c   : > { %1213 = dma.hbm_to_vmem [thread:$0]  (!%p1625_p11), %s1623_s10, 128, %s226_s12, %s215_s14  }
  0x4d   : > { %p1793_p10 = scmp.ne.s32.totalorder %s1788_s26, 0 }
  0x4e   : > { %s1646_s15 = sand.u32 (!%p1793_p10), 1, %s1477_s19   ;;  %p1794_p4 = scmp.ne.s32.totalorder (!%p1793_p10), %s1786_s24, 0 }
  0x4f   : > { %234 = sbr.rel (%p1793_p10) target bundleno = 1137 (0x471), region = 36  ;;  %s1649_s16 = sshll.u32 (!%p1793_p10), %s1646_s15, 3 }
  0x50   : > { %s237_s23 = scalar_lea.sflag (!%p1793_p10), [#allocation3], %s1646_s15  ;;  %s240_s27 = scalar_lea.vmem (!%p1793_p10), [#allocation2], %s1649_s16 }
  0x54   : > { %1456 = dma.done.wait (%p1794_p4), %s237_s23, 128  }
  0x55   : > { %1458 = vsyncadd (%p1794_p4), %s237_s23, 4294967168  ;;  %p1795_p8 = scmp.eq.s32.totalorder %s1549_s22, 0 }
  0x57   : > { %1460 = dma.done.wait (%p1795_p8), [#allocation6], 4160   ;;  %p1796_p7 = pmov %p1795_p8 }
  0x58   : > { %v1494_v0 = vmov 0.0   ;;  %vm1495_vm0 = vmmov 0   ;;  %v1267_v1 = vld [vmem:[#allocation5 + $0x38] sm:$0xff]   ;;  %v1268_v2 = vld [vmem:[#allocation5 + $0x30] sm:$0xff]   ;;  %v1269_v3 = vld [vmem:[#allocation5 + $0x28] sm:$0xff]   ;;  %s279_s13 = scalar_lea.vmem [#allocation9], %s1649_s16 }
  0x59   : > { %1462 = vsyncadd (%p1796_p7), [#allocation6], 4294963136  ;;  %1109 = vmatprep.subr.bf16.mxu0 %v1494_v0  ;;  %1125 = vmatprep.mubr.msk.bf16.mxu0 %vm1495_vm0, %v1494_v0  ;;  %v1270_v4 = vld [vmem:[#allocation5 + $0x20] sm:$0xff]   ;;  %v1271_v5 = vld [vmem:[#allocation5 + $0x18] sm:$0xff]   ;;  %s1069_s7 = sshll.u32 %s1549_s22, 7  ;;  %s890_s11 = sshll.u32 %s279_s13, 4  ;;  %s891_s11 = int_to_ptr.vmem [resolvable:$true] %s890_s11 }
  0x5a   : > { %1129 = vmatprep.subr.bf16.mxu1 %v1494_v0  ;;  %1145 = vmatprep.mubr.msk.bf16.mxu1 %vm1495_vm0, %v1494_v0  ;;  %v1272_v6 = vld [vmem:[#allocation5 + $0x10] sm:$0xff]   ;;  %v1273_v7 = vld [vmem:[#allocation5 + $0x8] sm:$0xff]   ;;  %v1274_v8 = vld [vmem:[#allocation5] sm:$0xff]   ;;  %s888_s9 = scalar_lea.hbm %s1781_s5, %s1069_s7  ;;  %s864_s23 = scalar_lea.sflag [#allocation10], %s1646_s15 }
  0x5b   : > { %1110 = vmatpush3.bf16.msra.mxu0 %v1267_v1  ;;  %v281_v9 = vld [vmem:[%s240_s27] sm:$0xff]  ;;  %v1277_v13 = vld [vmem:[#allocation5 + $0x68] sm:$0xff]   ;;  %v1278_v14 = vld [vmem:[#allocation5 + $0x60] sm:$0xff]   ;;  %s1387_s27 = scalar_lea.vmem %s891_s11, 128  ;;  %p1797_p0 = scmp.ne.s32.totalorder %s1791_s30, 0 }
  0x5c   : > { %1111 = vmatprep.subr.bf16.mxu0 %v1494_v0  ;;  %v282_v10 = vpack.c.bf16 %v281_v9, %v281_v9  ;;  %v1275_v11 = vld [vmem:[#allocation5 + $0x78] sm:$0xff]   ;;  %v1276_v12 = vld [vmem:[#allocation5 + $0x70] sm:$0xff]   ;;  %v1281_v17 = vld [vmem:[#allocation5 + $0x48] sm:$0xff]   ;;  %p1388_p11 = scmp.ne.s32.totalorder %s891_s11, %s1387_s27  ;;  %s1496_s24 = smov [#allocation9]  }
  0x5d   : > { %1130 = vmatpush3.bf16.msra.mxu1 %v1275_v11  ;;  %v1279_v15 = vld [vmem:[#allocation5 + $0x58] sm:$0xff]   ;;  %v1280_v16 = vld [vmem:[#allocation5 + $0x50] sm:$0xff]   ;;  %v1282_v18 = vld [vmem:[#allocation5 + $0x40] sm:$0xff]   ;;  %s1391_s26 = sshll.u32 %s1496_s24, 4  ;;  %s1392_s26 = int_to_ptr.vmem [resolvable:$false] %s1391_s26 }
  0x5e   : > { %1131 = vmatprep.subr.bf16.mxu1 %v1494_v0  ;;  %v1032_v41 = vld [vmem:[#allocation7] ss:$0 sm:$0xff]  ;;  %v1033_v43 = vld [vmem:[%s1779_s3] ss:$0 sm:$0xff]  ;;  %v1283_v48 = vld [vmem:[#allocation5 + $0xb8] sm:$0xff]   ;;  %p1389_p1 = pnand %p1388_p11, %p1797_p0  ;;  %s1393_s10 = scalar_lea.vmem %s1392_s26, 256 }
  0x5f   : > { %1112 = vmatpush3.bf16.msra.mxu0 %v1268_v2  ;;  %v1284_v49 = vld [vmem:[#allocation5 + $0xb0] sm:$0xff]   ;;  %v1285_v50 = vld [vmem:[#allocation5 + $0xa8] sm:$0xff]   ;;  %v1286_v51 = vld [vmem:[#allocation5 + $0xa0] sm:$0xff]   ;;  %p1394_p6 = scmp.lt.s32.totalorder %s891_s11, %s1392_s26  ;;  %p1395_p12 = scmp.lt.s32.totalorder %s1393_s10, %s1387_s27 }
  0x60   : > { %1113 = vmatprep.subr.bf16.mxu0 %v1494_v0  ;;  %v1287_v52 = vld [vmem:[#allocation5 + $0x98] sm:$0xff]   ;;  %v1288_v53 = vld [vmem:[#allocation5 + $0x90] sm:$0xff]   ;;  %v1289_v54 = vld [vmem:[#allocation5 + $0x88] sm:$0xff]   ;;  %p1390_p2 = pneg %p1389_p1 }
  0x61   : > { %1132 = vmatpush3.bf16.msra.mxu1 %v1276_v12  ;;  %v1290_v55 = vld [vmem:[#allocation5 + $0x80] sm:$0xff]   ;;  %p1396_p3 = por %p1395_p12, %p1394_p6 }
  0x62   : > { %1133 = vmatprep.subr.bf16.mxu1 %v1494_v0 }
  0x63   : > { %1114 = vmatpush3.bf16.msra.mxu0 %v1269_v3  ;;  %p1397_p9 = pnand %p1396_p3, %p1390_p2 }
  0x64   : > { %1115 = vmatprep.subr.bf16.mxu0 %v1494_v0 }
  0x65   : > { %1134 = vmatpush3.bf16.msra.mxu1 %v1277_v13 }
  0x66   : > { %1135 = vmatprep.subr.bf16.mxu1 %v1494_v0 }
  0x67   : > { %1116 = vmatpush3.bf16.msra.mxu0 %v1270_v4 }
  0x68   : > { %1117 = vmatprep.subr.bf16.mxu0 %v1494_v0 }
  0x69   : > { %1136 = vmatpush3.bf16.msra.mxu1 %v1278_v14 }
  0x6a   : > { %1137 = vmatprep.subr.bf16.mxu1 %v1494_v0 }
  0x6b   : > { %1118 = vmatpush3.bf16.msra.mxu0 %v1271_v5 }
  0x6c   : > { %1119 = vmatprep.subr.bf16.mxu0 %v1494_v0 }
  0x6d   : > { %1138 = vmatpush3.bf16.msra.mxu1 %v1279_v15  ;;  %v1042_v15 = vld [vmem:[#allocation7 + $0x1] ss:$0 sm:$0xff] }
  0x6e   : > { %1139 = vmatprep.subr.bf16.mxu1 %v1494_v0 }
  0x6f   : > { %1120 = vmatpush3.bf16.msra.mxu0 %v1272_v6 }
  0x70   : > { %1121 = vmatprep.subr.bf16.mxu0 %v1494_v0 }
  0x71   : > { %1140 = vmatpush3.bf16.msra.mxu1 %v1280_v16 }
  0x72   : > { %1141 = vmatprep.subr.bf16.mxu1 %v1494_v0 }
  0x73   : > { %1122 = vmatpush3.bf16.msra.mxu0 %v1273_v7 }
  0x74   : > { %1123 = vmatprep.subr.bf16.mxu0 %v1494_v0 }
  0x75   : > { %1142 = vmatpush3.bf16.msra.mxu1 %v1281_v17  ;;  %v1044_v17 = vld [vmem:[%s1779_s3 + $0x1] ss:$0 sm:$0xff] }
  0x76   : > { %1143 = vmatprep.subr.bf16.mxu1 %v1494_v0 }
  0x77   : > { %1124 = vmatpush3.bf16.msra.mxu0 %v1274_v8 }
  0x78   : > { %1149 = vmatprep.subr.bf16.mxu0 %v1494_v0 }
  0x79   : > { %1144 = vmatpush3.bf16.msra.mxu1 %v1282_v18 }
  0x7a   : > { %1126 = vmatmul.mubr.bf16.vlgmr.msra.gmra.mxu0 %v282_v10  ;;  %1169 = vmatprep.subr.bf16.mxu1 %v1494_v0 }
  0x7b   : > { %1165 = vmatprep.mubr.msk.bf16.mxu0 %vm1495_vm0, %v1494_v0  ;;  %1150 = vmatpush3.bf16.msra.mxu0 %v1283_v48 }
  0x7c   : > { %1151 = vmatprep.subr.bf16.mxu0 %v1494_v0 }
  0x7f   : > { %1152 = vmatpush3.bf16.msra.mxu0 %v1284_v49 }
  0x80   : > { %1153 = vmatprep.subr.bf16.mxu0 %v1494_v0 }
  0x83   : > { %1154 = vmatpush3.bf16.msra.mxu0 %v1285_v50 }
  0x84   : > { %1155 = vmatprep.subr.bf16.mxu0 %v1494_v0 }
  0x87   : > { %1156 = vmatpush3.bf16.msra.mxu0 %v1286_v51  ;;  %v1053_v51 = vld [vmem:[#allocation7 + $0x2] ss:$0 sm:$0xff] }
  0x88   : > { %1157 = vmatprep.subr.bf16.mxu0 %v1494_v0 }
  0x8b   : > { %1158 = vmatpush3.bf16.msra.mxu0 %v1287_v52 }
  0x8c   : > { %1159 = vmatprep.subr.bf16.mxu0 %v1494_v0 }
  0x8f   : > { %1160 = vmatpush3.bf16.msra.mxu0 %v1288_v53  ;;  %v1055_v53 = vld [vmem:[%s1779_s3 + $0x2] ss:$0 sm:$0xff] }
  0x90   : > { %1161 = vmatprep.subr.bf16.mxu0 %v1494_v0 }
  0x93   : > { %1162 = vmatpush3.bf16.msra.mxu0 %v1289_v54 }
  0x94   : > { %1163 = vmatprep.subr.bf16.mxu0 %v1494_v0 }
  0x97   : > { %1164 = vmatpush3.bf16.msra.mxu0 %v1290_v55 }
 0x13a   : > { %v381_v19 = vpop.f32.mrf.mxu0 }
 0x13b   : > { %v387_v20 = vrot.slane %v381_v19, 4 }
 0x13c   : > { %v1127_v21 = vpop.f32.mrf.mxu0 }
 0x13d   : > { %v388_v22 = vadd.f32 %v387_v20, %v381_v19 }
 0x13e   : > { %v384_v23 = vpop.f32.mrf.mxu0 }
 0x13f   : > { %v389_v24 = vrot.slane %v388_v22, 2  ;;  %v1292_v23 = vld [vmem:[#allocation5 + $0xf0] sm:$0xff]  }
 0x140   : > { %v1128_v25 = vpop.f32.mrf.mxu0 }
 0x141   : > { %v390_v26 = vadd.f32 %v389_v24, %v388_v22  ;;  %v1291_v22 = vld [vmem:[#allocation5 + $0xf8] sm:$0xff]   ;;  %v1293_v24 = vld [vmem:[#allocation5 + $0xe8] sm:$0xff]   ;;  %v1294_v25 = vld [vmem:[#allocation5 + $0xe0] sm:$0xff]  }
 0x143   : > { %v391_v27 = vrot.slane %v390_v26, 1 }
 0x145   : > { %v392_v28 = vadd.f32 %v391_v27, %v390_v26  ;;  %v1295_v26 = vld [vmem:[#allocation5 + $0xd8] sm:$0xff]   ;;  %v1296_v27 = vld [vmem:[#allocation5 + $0xd0] sm:$0xff]  }
 0x147   : > { %v394_v29 = vmul.f32 0.125, %v392_v28  ;;  %v1297_v28 = vld [vmem:[#allocation5 + $0xc8] sm:$0xff]  }
 0x149   : > { %v395_v30 = vsub.f32 %v381_v19, %v394_v29  ;;  %v1298_v29 = vld [vmem:[#allocation5 + $0xc0] sm:$0xff]  }
 0x14b   : > { %v396_v31 = vmul.f32 %v395_v30, %v395_v30 }
 0x14d   : > { %v397_v32 = vrot.slane %v396_v31, 4 }
 0x14f   : > { %v398_v33 = vadd.f32 %v397_v32, %v396_v31 }
 0x151   : > { %v399_v34 = vrot.slane %v398_v33, 2 }
 0x153   : > { %v400_v35 = vadd.f32 %v399_v34, %v398_v33 }
 0x155   : > { %v401_v36 = vrot.slane %v400_v35, 1 }
 0x157   : > { %v402_v37 = vadd.f32 %v401_v36, %v400_v35 }
 0x159   : > { %v403_v38 = vmul.f32 0.125, %v402_v37 }
 0x15b   : > { %v404_v39 = vadd.f32 1e-05, %v403_v38 }
 0x15d   : > { %1299 = vrsqrt.f32 %v404_v39 }
 0x16a   : > { %v1300_v40 = vpop.eup %1299 }
 0x16b   : > { %v406_v42 = vmul.f32 %v1300_v40, %v395_v30 }
 0x16d   : > { %v414_v44 = vmul.f32 %v1032_v41, %v406_v42 }
 0x16f   : > { %v422_v45 = vadd.f32 %v1033_v43, %v414_v44 }
 0x171   : > { %v423_v46 = vmax.f32 %v422_v45, 0.0 }
 0x173   : > { %v424_v47 = vpack.c.bf16 %v423_v46, %v423_v46 }
 0x175   : > { %1146 = vmatmul.mubr.bf16.vlgmr.msra.gmra.mxu1 %v424_v47 }
 0x176   : > { %1185 = vmatprep.mubr.msk.bf16.mxu1 %vm1495_vm0, %v1494_v0  ;;  %1170 = vmatpush3.bf16.msra.mxu1 %v1291_v22 }
 0x177   : > { %1171 = vmatprep.subr.bf16.mxu1 %v1494_v0 }
 0x17a   : > { %1172 = vmatpush3.bf16.msra.mxu1 %v1292_v23 }
 0x17b   : > { %1173 = vmatprep.subr.bf16.mxu1 %v1494_v0 }
 0x17e   : > { %1174 = vmatpush3.bf16.msra.mxu1 %v1293_v24 }
 0x17f   : > { %1175 = vmatprep.subr.bf16.mxu1 %v1494_v0 }
 0x182   : > { %1176 = vmatpush3.bf16.msra.mxu1 %v1294_v25 }
 0x183   : > { %1177 = vmatprep.subr.bf16.mxu1 %v1494_v0 }
 0x186   : > { %1178 = vmatpush3.bf16.msra.mxu1 %v1295_v26 }
 0x187   : > { %1179 = vmatprep.subr.bf16.mxu1 %v1494_v0 }
 0x18a   : > { %1180 = vmatpush3.bf16.msra.mxu1 %v1296_v27 }
 0x18b   : > { %1181 = vmatprep.subr.bf16.mxu1 %v1494_v0 }
 0x18e   : > { %1182 = vmatpush3.bf16.msra.mxu1 %v1297_v28 }
 0x18f   : > { %1183 = vmatprep.subr.bf16.mxu1 %v1494_v0 }
 0x192   : > { %1184 = vmatpush3.bf16.msra.mxu1 %v1298_v29 }
 0x235   : > { %v524_v56 = vpop.f32.mrf.mxu1 }
 0x236   : > { %v530_v57 = vrot.slane %v524_v56, 4 }
 0x237   : > { %v1147_v58 = vpop.f32.mrf.mxu1 }
 0x238   : > { %v531_v59 = vadd.f32 %v530_v57, %v524_v56 }
 0x239   : > { %v527_v60 = vpop.f32.mrf.mxu1 }
 0x23a   : > { %v532_v61 = vrot.slane %v531_v59, 2 }
 0x23b   : > { %v1148_v62 = vpop.f32.mrf.mxu1 }
 0x23c   : > { %v533_v63 = vadd.f32 %v532_v61, %v531_v59 }
 0x23e   : > { %v534_v1 = vrot.slane %v533_v63, 1 }
 0x240   : > { %v535_v2 = vadd.f32 %v534_v1, %v533_v63 }
 0x242   : > { %v536_v3 = vmul.f32 0.125, %v535_v2 }
 0x244   : > { %v537_v4 = vsub.f32 %v524_v56, %v536_v3 }
 0x246   : > { %v538_v5 = vmul.f32 %v537_v4, %v537_v4 }
 0x248   : > { %v539_v6 = vrot.slane %v538_v5, 4 }
 0x24a   : > { %v540_v7 = vadd.f32 %v539_v6, %v538_v5 }
 0x24c   : > { %v541_v8 = vrot.slane %v540_v7, 2 }
 0x24e   : > { %v542_v9 = vadd.f32 %v541_v8, %v540_v7 }
 0x250   : > { %v543_v10 = vrot.slane %v542_v9, 1 }
 0x252   : > { %v544_v11 = vadd.f32 %v543_v10, %v542_v9 }
 0x254   : > { %v545_v12 = vmul.f32 0.125, %v544_v11 }
 0x256   : > { %v546_v13 = vadd.f32 1e-05, %v545_v12 }
 0x258   : > { %1301 = vrsqrt.f32 %v546_v13 }
 0x265   : > { %v1302_v14 = vpop.eup %1301 }
 0x266   : > { %v548_v16 = vmul.f32 %v1302_v14, %v537_v4 }
 0x268   : > { %v557_v18 = vmul.f32 %v1042_v15, %v548_v16 }
 0x26a   : > { %v566_v19 = vadd.f32 %v1044_v17, %v557_v18 }
 0x26c   : > { %v567_v20 = vmax.f32 %v566_v19, 0.0 }
 0x26e   : > { %v569_v21 = vpack.c.bf16 %v567_v20, %v567_v20  ;;  %568 = vst [vmem:[%s279_s13] sm:$0xff] %v567_v20 }
 0x270   : > { %1166 = vmatmul.mubr.bf16.vlgmr.msra.gmra.mxu0 %v569_v21 }
 0x330   : > { %v669_v30 = vpop.f32.mrf.mxu0 }
 0x331   : > { %v675_v31 = vrot.slane %v669_v30, 4 }
 0x332   : > { %v1167_v32 = vpop.f32.mrf.mxu0 }
 0x333   : > { %v676_v33 = vadd.f32 %v675_v31, %v669_v30 }
 0x334   : > { %v672_v34 = vpop.f32.mrf.mxu0 }
 0x335   : > { %v677_v35 = vrot.slane %v676_v33, 2 }
 0x336   : > { %v1168_v36 = vpop.f32.mrf.mxu0 }
 0x337   : > { %v678_v37 = vadd.f32 %v677_v35, %v676_v33 }
 0x339   : > { %v679_v38 = vrot.slane %v678_v37, 1 }
 0x33b   : > { %v680_v39 = vadd.f32 %v679_v38, %v678_v37 }
 0x33d   : > { %v681_v40 = vmul.f32 0.125, %v680_v39 }
 0x33f   : > { %v682_v41 = vsub.f32 %v669_v30, %v681_v40 }
 0x341   : > { %v683_v42 = vmul.f32 %v682_v41, %v682_v41 }
 0x343   : > { %v684_v43 = vrot.slane %v683_v42, 4 }
 0x345   : > { %v685_v44 = vadd.f32 %v684_v43, %v683_v42 }
 0x347   : > { %v686_v45 = vrot.slane %v685_v44, 2 }
 0x349   : > { %v687_v46 = vadd.f32 %v686_v45, %v685_v44 }
 0x34b   : > { %v688_v0 = vrot.slane %v687_v46, 1 }
 0x34d   : > { %v689_v47 = vadd.f32 %v688_v0, %v687_v46 }
 0x34f   : > { %v690_v48 = vmul.f32 0.125, %v689_v47 }
 0x351   : > { %v691_v49 = vadd.f32 1e-05, %v690_v48 }
 0x353   : > { %1303 = vrsqrt.f32 %v691_v49 }
 0x360   : > { %v1304_v50 = vpop.eup %1303 }
 0x361   : > { %v693_v52 = vmul.f32 %v1304_v50, %v682_v41 }
 0x363   : > { %v702_v54 = vmul.f32 %v1053_v51, %v693_v52 }
 0x365   : > { %v711_v55 = vadd.f32 %v1055_v53, %v702_v54 }
 0x367   : > { %v712_v56 = vmax.f32 %v711_v55, 0.0 }
 0x369   : > { %v713_v57 = vpack.c.bf16 %v712_v56, %v712_v56 }
 0x36b   : > { %1186 = vmatmul.mubr.bf16.vlgmr.msra.gmra.mxu1 %v713_v57 }
 0x36c   : > { %1400 = shalt.err (!%p1397_p9)
}
 0x36d   : > { %s1401_s12 = scalar_lea.hbm %s888_s9, 128  ;;  %s1405_s6 = scalar_lea.hbm %s1781_s5, 256 }
 0x36e   : > { %p1402_p13 = scmp.ne.s32.totalorder %s888_s9, %s1401_s12  ;;  %p1406_p4 = scmp.lt.s32.totalorder %s888_s9, %s1781_s5 }
 0x36f   : > { %p1407_p8 = scmp.lt.s32.totalorder %s1405_s6, %s1401_s12 }
 0x370   : > { %p1403_p5 = pnand %p1402_p13, %p1797_p0 }
 0x371   : > { %p1408_p7 = por %p1407_p8, %p1406_p4 }
 0x372   : > { %p1404_p10 = pneg %p1403_p5 }
 0x374   : > { %p1409_p11 = pnand %p1408_p7, %p1404_p10 }
 0x376   : > { %1412 = shalt.err (!%p1409_p11)
}
 0x377   : > { %1200 = dma.vmem_to_hbm [thread:$0]  (%p1797_p0), %s891_s11, 128, %s888_s9, %s864_s23   ;;  %v1064_v17 = vld [vmem:[#allocation7 + $0x3] ss:$0 sm:$0xff]  ;;  %v1066_v19 = vld [vmem:[%s1779_s3 + $0x3] ss:$0 sm:$0xff] }
 0x378   : > { %s272_s23 = scalar_lea.vmem [#allocation8], %s1649_s16  ;;  %s875_s10 = scalar_lea.hbm %s1780_s4, %s1069_s7 }
 0x379   : > { %s877_s27 = sshll.u32 %s272_s23, 4  ;;  %s859_s12 = scalar_lea.sflag [#allocation4], %s1646_s15  ;;  %s878_s27 = int_to_ptr.vmem [resolvable:$true] %s877_s27 }
 0x37a   : > { %s1413_s13 = scalar_lea.vmem %s878_s27, 128  ;;  %s1497_s14 = smov [#allocation8]  }
 0x37b   : > { %p1414_p1 = scmp.ne.s32.totalorder %s878_s27, %s1413_s13  ;;  %s1417_s6 = sshll.u32 %s1497_s14, 4  ;;  %s1418_s6 = int_to_ptr.vmem [resolvable:$false] %s1417_s6 }
 0x37c   : > { %s1419_s16 = scalar_lea.vmem %s1418_s6, 256  ;;  %p1420_p12 = scmp.lt.s32.totalorder %s878_s27, %s1418_s6 }
 0x37d   : > { %p1415_p2 = pnand %p1414_p1, %p1797_p0  ;;  %p1421_p3 = scmp.lt.s32.totalorder %s1419_s16, %s1413_s13 }
 0x37f   : > { %p1416_p6 = pneg %p1415_p2  ;;  %p1422_p9 = por %p1421_p3, %p1420_p12 }
 0x381   : > { %p1423_p13 = pnand %p1422_p9, %p1416_p6 }
 0x42b   : > { %v813_v58 = vpop.f32.mrf.mxu1 }
 0x42c   : > { %v819_v59 = vrot.slane %v813_v58, 4 }
 0x42d   : > { %v1187_v60 = vpop.f32.mrf.mxu1 }
 0x42e   : > { %v820_v61 = vadd.f32 %v819_v59, %v813_v58 }
 0x42f   : > { %v816_v62 = vpop.f32.mrf.mxu1 }
 0x430   : > { %v821_v63 = vrot.slane %v820_v61, 2 }
 0x431   : > { %v1188_v1 = vpop.f32.mrf.mxu1 }
 0x432   : > { %v822_v2 = vadd.f32 %v821_v63, %v820_v61 }
 0x434   : > { %v823_v3 = vrot.slane %v822_v2, 1 }
 0x436   : > { %v824_v4 = vadd.f32 %v823_v3, %v822_v2 }
 0x438   : > { %v825_v5 = vmul.f32 0.125, %v824_v4 }
 0x43a   : > { %v826_v6 = vsub.f32 %v813_v58, %v825_v5 }
 0x43c   : > { %v827_v7 = vmul.f32 %v826_v6, %v826_v6 }
 0x43e   : > { %v828_v8 = vrot.slane %v827_v7, 4 }
 0x440   : > { %v829_v9 = vadd.f32 %v828_v8, %v827_v7 }
 0x442   : > { %v830_v10 = vrot.slane %v829_v9, 2 }
 0x444   : > { %v831_v11 = vadd.f32 %v830_v10, %v829_v9 }
 0x446   : > { %v832_v12 = vrot.slane %v831_v11, 1 }
 0x448   : > { %v833_v13 = vadd.f32 %v832_v12, %v831_v11 }
 0x44a   : > { %v834_v14 = vmul.f32 0.125, %v833_v13 }
 0x44c   : > { %v835_v15 = vadd.f32 1e-05, %v834_v14 }
 0x44e   : > { %1305 = vrsqrt.f32 %v835_v15 }
 0x45b   : > { %v1306_v16 = vpop.eup %1305 }
 0x45c   : > { %v837_v18 = vmul.f32 %v1306_v16, %v826_v6 }
 0x45e   : > { %v846_v20 = vmul.f32 %v1064_v17, %v837_v18 }
 0x460   : > { %v855_v21 = vadd.f32 %v1066_v19, %v846_v20 }
 0x462   : > { %v856_v22 = vmax.f32 %v855_v21, 0.0 }
 0x464   : > { %857 = vst [vmem:[%s272_s23] sm:$0xff] %v856_v22 }
 0x465   : > { %1426 = shalt.err (!%p1423_p13)
}
 0x466   : > { %s1427_s22 = scalar_lea.hbm %s875_s10, 128  ;;  %s1431_s8 = scalar_lea.hbm %s1780_s4, 256 }
 0x467   : > { %p1428_p5 = scmp.ne.s32.totalorder %s875_s10, %s1427_s22  ;;  %p1432_p8 = scmp.lt.s32.totalorder %s875_s10, %s1780_s4 }
 0x468   : > { %p1433_p7 = scmp.lt.s32.totalorder %s1431_s8, %s1427_s22 }
 0x469   : > { %p1429_p10 = pnand %p1428_p5, %p1797_p0 }
 0x46a   : > { %p1434_p11 = por %p1433_p7, %p1432_p8 }
 0x46b   : > { %p1430_p4 = pneg %p1429_p10 }
 0x46d   : > { %p1435_p1 = pnand %p1434_p11, %p1430_p4 }
 0x46f   : > { %1438 = shalt.err (!%p1435_p1)
}
 0x470   : > { %1199 = dma.vmem_to_hbm [thread:$0]  (%p1797_p0), %s878_s27, 128, %s875_s10, %s859_s12  }
 0x471 PF: > { %s902_s11 = sand.u32 1, %s1473_s18   ;;  %p1798_p2 = scmp.ne.s32.totalorder %s1787_s25, 0 }
 0x472   : > { %p1799_p6 = scmp.ge.s32.totalorder %s1485_s21, 2  ;;  %s903_s23 = scalar_lea.sflag [#allocation4], %s902_s11 }
 0x474   : > { %p1215_p12 = pnand %p1799_p6, %p1798_p2 }
 0x476   : > { %p1216_p3 = pneg %p1215_p12 }
 0x478   : > { %1464 = dma.done.wait (%p1216_p3), %s903_s23, 128  }
 0x479   : > { %1466 = vsyncadd (%p1216_p3), %s903_s23, 4294967168  ;;  %s912_s24 = scalar_lea.sflag [#allocation10], %s902_s11 }
 0x47a   : > { %1468 = dma.done.wait (%p1216_p3), %s912_s24, 128  }
 0x47b   : > { %1470 = vsyncadd (%p1216_p3), %s912_s24, 4294967168  ;;  %p23_p0 = scmp.ge.s32.totalorder %s1600_s17, 4   ;;  %s1800_s18 = smov %s1477_s19 }
 0x47c   : > { %s1801_s19 = smov %s1481_s20  ;;  %s1802_s20 = smov %s1609_s28 }
 0x47d   : > { %s1803_s21 = smov %s1600_s17  ;;  %25 = sbr.rel (!%p23_p0) target bundleno = 8 (0x8), region = 115 }
 0x482   :  { %917 = vsyncpa [#allocation3], 1 }
 0x483   :  { %919 = vsyncpa [#allocation3 + $0x1], 1 }
 0x484   :  { %920 = vsyncpa [#allocation6], 1 }
 0x485   :  { %921 = vsyncpa [#allocation4], 1 }
 0x486   :  { %923 = vsyncpa [#allocation4 + $0x1], 1 }
 0x487   :  { %924 = vsyncpa [#allocation10], 1 }
 0x488   :  { %926 = vsyncpa [#allocation10 + $0x1], 1 }

</bundles_post_ra>
